<compile_context>
chip_gen: v7x
topology: tpu7x:2x2x1
jax: 0.10.0
libtpu: 0.0.40
codegen_flags: <defaults>
</compile_context>

<pallas_src>
import jax
import jax.numpy as jnp
from jax.experimental import pallas as pl
from jax.experimental.pallas import tpu as pltpu

_SUBLANE = 8


def _copy_kernel(x_ref, o_ref):
    # Straight tile copy in the native dtype (no casts, no extra math).
    o_ref[...] = x_ref[...]


def _round_down(x, m):
    return (x // m) * m


def _lane_dense_shape(total, last_dim):
    """Pick a (rows, cols) view with cols a large multiple of 128 when possible."""
    for c in (4096, 2048, 1024, 512, 256, 128):
        if total % c == 0:
            return total // c, c
    # Fallback: keep the original trailing dim (block == full dim stays legal;
    # stores may be masked if last_dim is not a multiple of 128, copy is correct).
    return total // last_dim, last_dim


def _vmem_budget():
    """(per-block byte budget, vmem_limit_bytes), sized per TPU generation."""
    try:
        cap = pltpu.get_tpu_info().vmem_capacity_bytes
    except Exception:
        cap = 128 * 1024 * 1024
    # 2 input + 2 output double-buffers must fit with headroom:
    #   v7x (64 MiB physical)  -> ~4 MiB blocks, 32 MiB scoped limit
    #   v5e/v6e (128 MiB)      -> ~8 MiB blocks, 48 MiB scoped limit
    block_budget = min(8 * 1024 * 1024, cap // 16)
    vmem_limit = int(min(cap // 2, 4 * block_budget + (16 << 20)))
    return block_budget, vmem_limit


def _pallas_copy(x):
    """Materialized identity copy via a tiled, lane-dense Pallas kernel."""
    orig_shape = x.shape
    total = int(x.size)
    if x.ndim == 0 or total == 0:
        return x

    itemsize = jnp.dtype(x.dtype).itemsize
    rows, cols = _lane_dense_shape(total, orig_shape[-1])
    x2 = x.reshape(rows, cols)

    # Sub-32-bit dtypes pack along sublanes: bf16 needs rows % 16, int8 % 32.
    packing = max(1, 4 // itemsize)
    row_align = _SUBLANE * packing

    block_budget, vmem_limit = _vmem_budget()
    if rows <= row_align:
        tm = rows  # block equals the full row extent -> always a legal block
    else:
        tm_raw = max(row_align, block_budget // (cols * itemsize))
        tm = max(row_align, _round_down(min(tm_raw, rows), row_align))

    grid = (pl.cdiv(rows, tm),)  # no exact-divisor requirement; edges are masked

    out = pl.pallas_call(
        _copy_kernel,
        out_shape=jax.ShapeDtypeStruct((rows, cols), x.dtype),
        grid=grid,
        in_specs=[pl.BlockSpec((tm, cols), lambda i: (i, 0))],
        out_specs=pl.BlockSpec((tm, cols), lambda i: (i, 0)),
        compiler_params=pltpu.CompilerParams(
            dimension_semantics=("parallel",),
            vmem_limit_bytes=vmem_limit,
        ),
        cost_estimate=pl.CostEstimate(
            flops=0,
            transcendentals=0,
            bytes_accessed=2 * total * itemsize,
        ),
    )(x2)
    return out.reshape(orig_shape)


def identity_norm(x, embedding=None, *, materialize=False):
    """Pallas equivalent of IdentityNorm.forward(input, embedding=None).

    IdentityNorm is a pure pass-through, so the default (and fastest) path
    launches no kernel and returns the input unchanged — zero HBM traffic.
    Set materialize=True only if the call site requires a fresh output buffer;
    that path runs the byte-budgeted, lane-dense Pallas copy kernel above.
    """
    if isinstance(x, tuple):
        return x
    assert embedding is None
    if not materialize:
        return x
    return _pallas_copy(x)


if __name__ == "__main__":
    # Shapes consistent with a transformer norm call site: (batch, seq, d_model).
    B, T, D = 2, 8, 256
    key = jax.random.PRNGKey(0)
    x = jax.random.normal(key, (B, T, D), dtype=jnp.float32)

    # Default path: pure pass-through, no kernel launched (matches the module).
    y = identity_norm(x, embedding=None)
    assert y is x

    # Tuple inputs pass through untouched, matching the PyTorch forward.
    tup = (x, x + 1.0)
    assert identity_norm(tup) is tup

    # Materialized-copy path: run the Pallas kernel once and verify it.
    out = identity_norm(x, embedding=None, materialize=True)
    out = jax.block_until_ready(out)
    assert out.shape == x.shape and out.dtype == x.dtype
    assert jnp.array_equal(out, x), "identity copy kernel altered the input"

    # Awkward shape: trailing dim not a multiple of 128, rows not a multiple of 8,
    # bf16 — exercises the full-dim-block fallback and cdiv/masked edges.
    x2 = jax.random.normal(jax.random.PRNGKey(1), (3, 5, 96), dtype=jnp.bfloat16)
    out2 = jax.block_until_ready(identity_norm(x2, materialize=True))
    assert out2.shape == x2.shape and out2.dtype == x2.dtype
    assert jnp.array_equal(out2, x2), "identity copy kernel altered the bf16 input"

    print("KERNEL_OK")
</pallas_src>

<mosaic_0001>
module attributes {stable_mosaic.version = 11 : i64} {
  func.func @_copy_kernel(%arg0: i32, %arg1: memref<1x4096xf32, #tpu.memory_space<vmem>>, %arg2: memref<1x4096xf32, #tpu.memory_space<vmem>>) attributes {dimension_semantics = [#tpu.dimension_semantics<parallel>], iteration_bounds = array<i64: 1>, scalar_prefetch = 0 : i64, scratch_operands = 0 : i64, tpu.core_type = #tpu.core_type<tc>, window_params = [{transform_indices = @transform_0, window_bounds = array<i64: 1, 4096>}, {transform_indices = @transform_1, window_bounds = array<i64: 1, 4096>}]} {
    %c0 = arith.constant 0 : index
    %c0_0 = arith.constant 0 : index
    %0 = vector.load %arg1[%c0, %c0_0] : memref<1x4096xf32, #tpu.memory_space<vmem>>, vector<1x4096xf32>
    %c0_1 = arith.constant 0 : index
    %c0_2 = arith.constant 0 : index
    %1 = vector.load %arg2[%c0_1, %c0_2] : memref<1x4096xf32, #tpu.memory_space<vmem>>, vector<1x4096xf32>
    tpu.vector_store %arg2[%c0_1, %c0_2], %0 {strides = array<i32>} : memref<1x4096xf32, #tpu.memory_space<vmem>>, vector<1x4096xf32>,
    return
  }
  func.func @transform_0(%arg0: i32) -> (i32, i32) {
    %c0_i32 = arith.constant 0 : i32
    %c0_i32_0 = arith.constant 0 : i32
    return %arg0, %c0_i32 : i32, i32
  }
  func.func @transform_1(%arg0: i32) -> (i32, i32) {
    %c0_i32 = arith.constant 0 : i32
    %c0_i32_0 = arith.constant 0 : i32
    return %arg0, %c0_i32 : i32, i32
  }
}

</mosaic_0001>

<bundles_post_ra>
// kernel: tpu_custom_call.1
= control target key start
LH: loop header
LB: loop body
LE: loop exit
PB: predicated region body
PF: predicated region fallthrough
CT: control target
= control target key end

     0   :  { %6 = vsyncpa [#allocation3], 0  ;;  %s130_s0 = inlined_call_operand.hbm [shape: f32[1,4096], index: 0, kind: input, shape index: {}]   ;;  %s131_s1 = inlined_call_operand.hbm [shape: f32[1,4096], index: 1, kind: output, shape index: {}]  }
   0x1   :  { %7 = vsyncpa [#allocation4], 0  ;;  %s94_s6 = smov [#allocation2]   ;;  %s46_s10 = scalar_lea.hbm %s130_s0, 512 }
   0x2   :  { %s14_s7 = sshll.u32 %s94_s6, 4  ;;  %p47_p0 = scmp.ne.s32.totalorder %s130_s0, %s46_s10  ;;  %s15_s7 = int_to_ptr.vmem [resolvable:$true] %s14_s7 }
   0x3   :  { %p50_p1 = scmp.lt.u32.totalorder %s46_s10, %s130_s0 }
   0x5   :  { %p52_p2 = pnand %p50_p1, %p47_p0 }
   0x7   :  { %55 = shalt.err (!%p52_p2)
}
   0x8   :  { %s56_s15 = scalar_lea.vmem %s15_s7, 512  ;;  %p61_p4 = scmp.lt.s32.totalorder %s15_s7, %s15_s7 }
   0x9   :  { %p57_p3 = scmp.ne.s32.totalorder %s15_s7, %s56_s15  ;;  %p62_p5 = scmp.lt.s32.totalorder %s56_s15, %s56_s15 }
   0xb   :  { %p63_p6 = por %p62_p5, %p61_p4 }
   0xd   :  { %p64_p7 = pnand %p63_p6, %p57_p3 }
   0xf   :  { %67 = shalt.err (!%p64_p7)
}
  0x10   :  { %17 = dma.hbm_to_vmem [thread:$0]  %s130_s0, 512, %s15_s7, [#allocation3]  }
  0x11   :  { %90 = dma.done.wait [#allocation3], 512  }
  0x12   :  { %91 = vsyncadd [#allocation3], 4294966784  ;;  %s95_s18 = smov [#allocation5]   ;;  %v21_v0 = vld [vmem:[#allocation2] sm:$0xff]  ;;  %v22_v1 = vld [vmem:[#allocation2 + $0x8] sm:$0xff] }
  0x13   :  { %s35_s19 = sshll.u32 %s95_s18, 4  ;;  %v23_v2 = vld [vmem:[#allocation2 + $0x10] sm:$0xff]  ;;  %25 = vst [vmem:[#allocation5] sm:$0xff] %v21_v0  ;;  %26 = vst [vmem:[#allocation5 + $0x8] sm:$0xff] %v22_v1  ;;  %v24_v3 = vld [vmem:[#allocation2 + $0x18] sm:$0xff]  ;;  %s36_s19 = int_to_ptr.vmem [resolvable:$true] %s35_s19 }
  0x14   :  { %27 = vst [vmem:[#allocation5 + $0x10] sm:$0xff] %v23_v2  ;;  %28 = vst [vmem:[#allocation5 + $0x18] sm:$0xff] %v24_v3  ;;  %s68_s20 = scalar_lea.vmem %s36_s19, 512  ;;  %p73_p9 = scmp.lt.s32.totalorder %s36_s19, %s36_s19 }
  0x15   :  { %p69_p8 = scmp.ne.s32.totalorder %s36_s19, %s68_s20  ;;  %p74_p10 = scmp.lt.s32.totalorder %s68_s20, %s68_s20 }
  0x17   :  { %p75_p11 = por %p74_p10, %p73_p9 }
  0x19   :  { %p76_p12 = pnand %p75_p11, %p69_p8 }
  0x1b   :  { %79 = shalt.err (!%p76_p12)
}
  0x1c   :  { %s80_s22 = scalar_lea.hbm %s131_s1, 512 }
  0x1d   :  { %p81_p13 = scmp.ne.s32.totalorder %s131_s1, %s80_s22  ;;  %p84_p0 = scmp.lt.u32.totalorder %s80_s22, %s131_s1 }
  0x1f   :  { %p86_p1 = pnand %p84_p0, %p81_p13 }
  0x21   :  { %89 = shalt.err (!%p86_p1)
}
  0x22   :  { %38 = dma.vmem_to_hbm [thread:$0]  %s36_s19, 512, %s131_s1, [#allocation4]  }
  0x23   :  { %92 = dma.done.wait [#allocation4], 512  }
  0x24   :  { %93 = vsyncadd [#allocation4], 4294966784 }
  0x25   :  { %42 = vsyncpa [#allocation3], 1 }
  0x26   :  { %43 = vsyncpa [#allocation4], 1 }

</bundles_post_ra>
